<compile_context>
chip_gen: v5e
topology: v5e:2x2
jax: 0.10.0
libtpu: 0.0.40
codegen_flags: <defaults>
</compile_context>

<pallas_src>
import functools
from typing import NamedTuple

import jax
import jax.numpy as jnp
from jax.experimental import pallas as pl
from jax.experimental.pallas import tpu as pltpu

_LANE = 128            # last-dim (lane) alignment
_SUBLANE_F32 = 8       # second-to-last alignment for 4-byte dtypes
_SUBLANE_PACKED = 16   # second-to-last alignment for 2-byte dtypes (bf16 packs 2 rows/sublane)


def _round_up(n, m):
    return ((n + m - 1) // m) * m


class PreparedParams(NamedTuple):
    """Weights prepared once (pad -> transpose -> cast), kept out of the per-forward path."""
    WeT: jax.Array   # (D_in_p, D_h_p)  encode weight, (K, N) layout, compute dtype
    be: jax.Array    # (1, D_h_p)       encode bias, f32
    WdT: jax.Array   # (D_h_p, D_in_p)  decode weight, (K, N) layout, compute dtype
    bd: jax.Array    # (1, D_in_p)      decode bias, f32
    d_in: int        # original input_neurons
    d_h: int         # original hidden_neurons


def prepare_params(We, be, Wd, bd, compute_dtype=jnp.bfloat16):
    """Pad feature dims to lane multiples (exact under linear+bias+ReLU), transpose the
    PyTorch (out, in) weights to MXU-native (in, out), and cast matmul operands to bf16.
    Call once at init / after each optimizer step."""
    D_h, D_in = We.shape
    D_in_p = _round_up(D_in, _LANE)
    D_h_p = _round_up(D_h, _LANE)
    WeT = jnp.pad(We, ((0, D_h_p - D_h), (0, D_in_p - D_in))).T.astype(compute_dtype)
    WdT = jnp.pad(Wd, ((0, D_in_p - D_in), (0, D_h_p - D_h))).T.astype(compute_dtype)
    be_p = jnp.pad(be.astype(jnp.float32), (0, D_h_p - D_h)).reshape(1, D_h_p)
    bd_p = jnp.pad(bd.astype(jnp.float32), (0, D_in_p - D_in)).reshape(1, D_in_p)
    return PreparedParams(WeT=WeT, be=be_p, WdT=WdT, bd=bd_p, d_in=int(D_in), d_h=int(D_h))


def _autoencoder_kernel(x_ref, weT_ref, be_ref, wdT_ref, bd_ref, enc_ref, dec_ref):
    """One batch tile, fully VMEM-resident: encode -> ReLU -> decode -> ReLU."""
    # Encode: (tb, K) @ (K, N) with bf16 operands, f32 MXU accumulation.
    h = jnp.dot(x_ref[...], weT_ref[...], preferred_element_type=jnp.float32)
    enc = jnp.maximum(h + be_ref[...], 0.0)              # bias + ReLU in f32 (VPU)
    enc_ref[...] = enc.astype(enc_ref.dtype)
    # Decode: re-cast the activation to the MXU operand dtype, accumulate in f32.
    d = jnp.dot(enc.astype(wdT_ref.dtype), wdT_ref[...], preferred_element_type=jnp.float32)
    dec_ref[...] = jnp.maximum(d + bd_ref[...], 0.0).astype(dec_ref.dtype)


@functools.partial(jax.jit, static_argnums=(5, 6, 7))
def _forward_impl(x, WeT, be, WdT, bd, d_in, d_h, max_tb):
    B = x.shape[0]
    D_in_p, D_h_p = WeT.shape
    compute_dtype = WeT.dtype
    out_dtype = x.dtype
    cbytes = jnp.dtype(compute_dtype).itemsize
    obytes = jnp.dtype(out_dtype).itemsize

    # ---- batch tiling: sublane-aligned tiles, >=2 grid steps whenever possible --------
    u = _SUBLANE_PACKED if cbytes < 4 else _SUBLANE_F32
    Bu = _round_up(B, u)
    if Bu <= u:
        tb = u                                   # single minimal tile (nothing to split)
    elif Bu <= 2 * max_tb:
        tb = max(_round_up(Bu // 2, u), u)       # 2 tiles: both v7x TCs busy + pipelining
    else:
        tb = _round_up(max_tb, u)                # large batches: big aligned tiles
    B_p = _round_up(B, tb)
    grid = (B_p // tb,)

    # Per-call prep touches only x (weights were prepared once, outside the hot path).
    xp = jnp.pad(x, ((0, B_p - B), (0, D_in_p - d_in))).astype(compute_dtype)

    # ---- VMEM budget: weights/biases x1 buffer, x/enc/dec tiles x2 buffers ------------
    needed = (2 * D_in_p * D_h_p * cbytes                    # WeT + WdT (single-buffered)
              + (D_in_p + D_h_p) * 4                         # biases (single-buffered)
              + 2 * tb * (D_in_p * cbytes                    # x tile   (double-buffered)
                          + D_h_p * obytes                   # enc tile (double-buffered)
                          + D_in_p * obytes))                # dec tile (double-buffered)
    vmem_limit = min(max(needed * 3 // 2 + (2 << 20), 16 << 20), 64 << 20)

    cost = pl.CostEstimate(
        flops=4 * B_p * D_in_p * D_h_p,                      # two matmuls, 2*M*N*K each
        transcendentals=0,
        bytes_accessed=(xp.size * cbytes + (WeT.size + WdT.size) * cbytes
                        + (be.size + bd.size) * 4
                        + B_p * D_h_p * obytes + B_p * D_in_p * obytes),
    )

    # Constant-index operands: fetched once, kept resident with a single VMEM buffer.
    def _const_spec(shape):
        return pl.BlockSpec(shape, lambda i: (0, 0), pipeline_mode=pl.Buffered(1))

    enc_p, dec_p = pl.pallas_call(
        _autoencoder_kernel,
        out_shape=(
            jax.ShapeDtypeStruct((B_p, D_h_p), out_dtype),
            jax.ShapeDtypeStruct((B_p, D_in_p), out_dtype),
        ),
        grid_spec=pltpu.PrefetchScalarGridSpec(
            num_scalar_prefetch=0,
            grid=grid,
            in_specs=[
                pl.BlockSpec((tb, D_in_p), lambda i: (i, 0)),   # x tile (pipelined over batch)
                _const_spec((D_in_p, D_h_p)),                   # encode weight (K, N), bf16
                _const_spec((1, D_h_p)),                        # encode bias, f32
                _const_spec((D_h_p, D_in_p)),                   # decode weight (K, N), bf16
                _const_spec((1, D_in_p)),                       # decode bias, f32
            ],
            out_specs=[
                pl.BlockSpec((tb, D_h_p), lambda i: (i, 0)),    # encoded tile
                pl.BlockSpec((tb, D_in_p), lambda i: (i, 0)),   # decoded tile
            ],
        ),
        compiler_params=pltpu.CompilerParams(
            dimension_semantics=("parallel",),
            vmem_limit_bytes=int(vmem_limit),
        ),
        cost_estimate=cost,
    )(xp, WeT, be, WdT, bd)

    # Slice the zero padding back off.
    return enc_p[:B, :d_h], dec_p[:B, :d_in]


def autoencoder_forward(x, params: PreparedParams, max_tb: int = 256):
    """Pallas forward pass matching the PyTorch module: returns (encoded, decoded).

    max_tb: batch-tile cap. 256 fills the 256-wide MXU and stays inside v7x's VMEM;
    it can be raised (512+) on v5e/v6e (128 MiB VMEM) when the padded weights are small.
    """
    assert x.shape[-1] == params.d_in, "input feature dim does not match prepared params"
    return _forward_impl(x, params.WeT, params.be, params.WdT, params.bd,
                         params.d_in, params.d_h, int(max_tb))


def init_params(key, input_neurons, hidden_neurons, dtype=jnp.float32):
    """Deterministic PyTorch-style Linear init: U(-1/sqrt(fan_in), 1/sqrt(fan_in))."""
    k1, k2, k3, k4 = jax.random.split(key, 4)
    bound_e = 1.0 / (input_neurons ** 0.5)
    bound_d = 1.0 / (hidden_neurons ** 0.5)
    We = jax.random.uniform(k1, (hidden_neurons, input_neurons), dtype, -bound_e, bound_e)
    be = jax.random.uniform(k2, (hidden_neurons,), dtype, -bound_e, bound_e)
    Wd = jax.random.uniform(k3, (input_neurons, hidden_neurons), dtype, -bound_d, bound_d)
    bd = jax.random.uniform(k4, (input_neurons,), dtype, -bound_d, bound_d)
    return We, be, Wd, bd


def reference_forward(x, We, be, Wd, bd):
    enc = jnp.maximum(x @ We.T + be, 0.0)
    dec = jnp.maximum(enc @ Wd.T + bd, 0.0)
    return enc, dec


if __name__ == "__main__":
    key = jax.random.PRNGKey(0)
    k_x, k_p = jax.random.split(key)

    batch = 32
    input_neurons = 64
    hidden_neurons = 32

    x = jax.random.normal(k_x, (batch, input_neurons), jnp.float32)
    We, be, Wd, bd = init_params(k_p, input_neurons, hidden_neurons)

    params = prepare_params(We, be, Wd, bd)                 # one-time pad/transpose/cast
    enc, dec = autoencoder_forward(x, params)
    enc, dec = jax.block_until_ready((enc, dec))

    assert enc.shape == (batch, hidden_neurons)
    assert dec.shape == (batch, input_neurons)

    # Check 1: against the full-precision reference (bf16-operand-level tolerance).
    enc_ref, dec_ref = reference_forward(x, We, be, Wd, bd)
    assert jnp.allclose(enc, enc_ref, atol=2e-2, rtol=2e-2)
    assert jnp.allclose(dec, dec_ref, atol=2e-2, rtol=2e-2)

    # Check 2: against a bf16-operand / f32-accumulation emulation (tight tolerance).
    f32 = jnp.float32
    xb = x.astype(jnp.bfloat16).astype(f32)
    Web = We.astype(jnp.bfloat16).astype(f32)
    Wdb = Wd.astype(jnp.bfloat16).astype(f32)
    enc_emul = jnp.maximum(xb @ Web.T + be, 0.0)
    dec_emul = jnp.maximum(enc_emul.astype(jnp.bfloat16).astype(f32) @ Wdb.T + bd, 0.0)
    assert jnp.allclose(enc, enc_emul, atol=5e-3, rtol=5e-3)
    assert jnp.allclose(dec, dec_emul, atol=5e-3, rtol=5e-3)

    print("KERNEL_OK")
</pallas_src>

<mosaic_0001>
module attributes {stable_mosaic.version = 11 : i64} {
  func.func @_autoencoder_kernel(%arg0: i32, %arg1: memref<16x128xbf16, #tpu.memory_space<vmem>>, %arg2: memref<128x128xbf16, #tpu.memory_space<vmem>>, %arg3: memref<1x128xf32, #tpu.memory_space<vmem>>, %arg4: memref<128x128xbf16, #tpu.memory_space<vmem>>, %arg5: memref<1x128xf32, #tpu.memory_space<vmem>>, %arg6: memref<16x128xf32, #tpu.memory_space<vmem>>, %arg7: memref<16x128xf32, #tpu.memory_space<vmem>>) attributes {dimension_semantics = [#tpu.dimension_semantics<parallel>], iteration_bounds = array<i64: 2>, scalar_prefetch = 0 : i64, scratch_operands = 0 : i64, tpu.core_type = #tpu.core_type<tc>, window_params = [{transform_indices = @transform_0, window_bounds = array<i64: 16, 128>}, {pipeline_mode = #tpu.pipeline_mode<synchronous>, transform_indices = @transform_1, window_bounds = array<i64: 128, 128>}, {pipeline_mode = #tpu.pipeline_mode<synchronous>, transform_indices = @transform_2, window_bounds = array<i64: 1, 128>}, {pipeline_mode = #tpu.pipeline_mode<synchronous>, transform_indices = @transform_3, window_bounds = array<i64: 128, 128>}, {pipeline_mode = #tpu.pipeline_mode<synchronous>, transform_indices = @transform_4, window_bounds = array<i64: 1, 128>}, {transform_indices = @transform_5, window_bounds = array<i64: 16, 128>}, {transform_indices = @transform_6, window_bounds = array<i64: 16, 128>}]} {
    %c0 = arith.constant 0 : index
    %c0_0 = arith.constant 0 : index
    %0 = vector.load %arg1[%c0, %c0_0] : memref<16x128xbf16, #tpu.memory_space<vmem>>, vector<16x128xbf16>
    %c0_1 = arith.constant 0 : index
    %c0_2 = arith.constant 0 : index
    %1 = vector.load %arg2[%c0_1, %c0_2] : memref<128x128xbf16, #tpu.memory_space<vmem>>, vector<128x128xbf16>
    %cst = arith.constant dense<0.000000e+00> : vector<16x128xf32>
    %2 = tpu.matmul %0, %1, %cst {dimension_numbers = #tpu.dot_dimension_numbers<[1], [0], [0], [1], [0, 0, 1, 1], [], []>} : vector<16x128xbf16>, vector<128x128xbf16>, vector<16x128xf32> -> vector<16x128xf32>
    %c0_3 = arith.constant 0 : index
    %c0_4 = arith.constant 0 : index
    %3 = vector.load %arg3[%c0_3, %c0_4] : memref<1x128xf32, #tpu.memory_space<vmem>>, vector<1x128xf32>
    %4 = vector.broadcast %3 : vector<1x128xf32> to vector<16x128xf32>
    %5 = arith.addf %2, %4 : vector<16x128xf32>
    %cst_5 = arith.constant 0.000000e+00 : f32
    %6 = vector.broadcast %cst_5 : f32 to vector<16x128xf32>
    %7 = arith.maximumf %5, %6 : vector<16x128xf32>
    %c0_6 = arith.constant 0 : index
    %c0_7 = arith.constant 0 : index
    %8 = vector.load %arg6[%c0_6, %c0_7] : memref<16x128xf32, #tpu.memory_space<vmem>>, vector<16x128xf32>
    tpu.vector_store %arg6[%c0_6, %c0_7], %7 {strides = array<i32>} : memref<16x128xf32, #tpu.memory_space<vmem>>, vector<16x128xf32>,
    %9 = arith.truncf %7 : vector<16x128xf32> to vector<16x128xbf16>
    %c0_8 = arith.constant 0 : index
    %c0_9 = arith.constant 0 : index
    %10 = vector.load %arg4[%c0_8, %c0_9] : memref<128x128xbf16, #tpu.memory_space<vmem>>, vector<128x128xbf16>
    %cst_10 = arith.constant dense<0.000000e+00> : vector<16x128xf32>
    %11 = tpu.matmul %9, %10, %cst_10 {dimension_numbers = #tpu.dot_dimension_numbers<[1], [0], [0], [1], [0, 0, 1, 1], [], []>} : vector<16x128xbf16>, vector<128x128xbf16>, vector<16x128xf32> -> vector<16x128xf32>
    %c0_11 = arith.constant 0 : index
    %c0_12 = arith.constant 0 : index
    %12 = vector.load %arg5[%c0_11, %c0_12] : memref<1x128xf32, #tpu.memory_space<vmem>>, vector<1x128xf32>
    %13 = vector.broadcast %12 : vector<1x128xf32> to vector<16x128xf32>
    %14 = arith.addf %11, %13 : vector<16x128xf32>
    %cst_13 = arith.constant 0.000000e+00 : f32
    %15 = vector.broadcast %cst_13 : f32 to vector<16x128xf32>
    %16 = arith.maximumf %14, %15 : vector<16x128xf32>
    %c0_14 = arith.constant 0 : index
    %c0_15 = arith.constant 0 : index
    %17 = vector.load %arg7[%c0_14, %c0_15] : memref<16x128xf32, #tpu.memory_space<vmem>>, vector<16x128xf32>
    tpu.vector_store %arg7[%c0_14, %c0_15], %16 {strides = array<i32>} : memref<16x128xf32, #tpu.memory_space<vmem>>, vector<16x128xf32>,
    return
  }
  func.func @transform_0(%arg0: i32) -> (i32, i32) {
    %c0_i32 = arith.constant 0 : i32
    %c0_i32_0 = arith.constant 0 : i32
    return %arg0, %c0_i32 : i32, i32
  }
  func.func @transform_1(%arg0: i32) -> (i32, i32) {
    %c0_i32 = arith.constant 0 : i32
    %c0_i32_0 = arith.constant 0 : i32
    %c0_i32_1 = arith.constant 0 : i32
    return %c0_i32, %c0_i32_0 : i32, i32
  }
  func.func @transform_2(%arg0: i32) -> (i32, i32) {
    %c0_i32 = arith.constant 0 : i32
    %c0_i32_0 = arith.constant 0 : i32
    %c0_i32_1 = arith.constant 0 : i32
    return %c0_i32, %c0_i32_0 : i32, i32
  }
  func.func @transform_3(%arg0: i32) -> (i32, i32) {
    %c0_i32 = arith.constant 0 : i32
    %c0_i32_0 = arith.constant 0 : i32
    %c0_i32_1 = arith.constant 0 : i32
    return %c0_i32, %c0_i32_0 : i32, i32
  }
  func.func @transform_4(%arg0: i32) -> (i32, i32) {
    %c0_i32 = arith.constant 0 : i32
    %c0_i32_0 = arith.constant 0 : i32
    %c0_i32_1 = arith.constant 0 : i32
    return %c0_i32, %c0_i32_0 : i32, i32
  }
  func.func @transform_5(%arg0: i32) -> (i32, i32) {
    %c0_i32 = arith.constant 0 : i32
    %c0_i32_0 = arith.constant 0 : i32
    return %arg0, %c0_i32 : i32, i32
  }
  func.func @transform_6(%arg0: i32) -> (i32, i32) {
    %c0_i32 = arith.constant 0 : i32
    %c0_i32_0 = arith.constant 0 : i32
    return %arg0, %c0_i32 : i32, i32
  }
}

</mosaic_0001>

<bundles_post_ra>
// kernel: _forward_impl.1
= control target key start
LH: loop header
LB: loop body
LE: loop exit
PB: predicated region body
PF: predicated region fallthrough
CT: control target
= control target key end

     0   :  { %12 = vsyncpa [#allocation3], 0  ;;  %s1096_s0 = inlined_call_operand.vmem [shape: bf16[32,128], index: 0, kind: input, shape index: {}]   ;;  %s1097_s1 = inlined_call_operand.vmem [shape: bf16[128,128], index: 1, kind: input, shape index: {}]   ;;  %s1098_s2 = inlined_call_operand.vmem [shape: f32[1,128], index: 2, kind: input, shape index: {}]   ;;  %s1099_s3 = inlined_call_operand.hbm [shape: bf16[128,128], index: 3, kind: input, shape index: {}]   ;;  %s1100_s4 = inlined_call_operand.vmem [shape: f32[1,128], index: 4, kind: input, shape index: {}]   ;;  %s1101_s5 = inlined_call_operand.hbm [shape: f32[32,128], index: 5, kind: output, shape index: {0}]   ;;  %s1102_s6 = inlined_call_operand.hbm [shape: f32[32,128], index: 6, kind: output, shape index: {1}]  }
   0x1   :  { %13 = vsyncpa [#allocation4], 0 }
   0x2   :  { %15 = vsyncpa [#allocation4 + $0x1], 0 }
   0x3   :  { %16 = vsyncpa [#allocation7], 0 }
   0x4   :  { %18 = vsyncpa [#allocation7 + $0x1], 0  ;;  %s944_s21 = smov 0   ;;  %s946_s22 = smov 0  }
   0x5   :  { %s948_s23 = smov 0   ;;  %s950_s24 = smov 0  }
   0x6 LB: > { %s965_s25 = sadd.s32 4294967295, %s902_s24   ;;  %s608_s26 = sadd.s32 4294967294, %s902_s24   ;;  %s902_s24 = sphi %s950_s24, %s1108_s24   ;;  %s898_s23 = sphi %s948_s23, %s1107_s23   ;;  %s894_s22 = sphi %s946_s22, %s1106_s22   ;;  %s890_s21 = sphi %s944_s21, %s1105_s21  }
   0x7   : > { %s969_s27 = sadd.s32 1, %s902_s24   ;;  %s141_s28 = sadd.s32 1, %s898_s23 }
   0x8   : > { %s138_s29 = ssub.s32 %s902_s24, %s969_s27  ;;  %p151_p0 = scmp.ne.s32.totalorder %s898_s23, %s894_s22 }
   0x9   : > { %p139_p1 = scmp.eq.s32.totalorder %s138_s29, 0  ;;  %p152_p2 = scmp.eq.s32.totalorder %s965_s25, 1 }
   0xa   : > { %p157_p3 = scmp.ne.s32.totalorder %s894_s22, %s890_s21  ;;  %p158_p4 = scmp.eq.s32.totalorder %s608_s26, 1 }
   0xb   : > { %s980_s30 = scalar_select %p139_p1, %s898_s23, %s141_s28  }
   0xc   : > { %p982_p5 = por %p152_p2, %p151_p0  ;;  %p986_p6 = por %p158_p4, %p157_p3 }
   0xd   : > { %p609_p7 = scmp.ge.s32.totalorder %s902_s24, 1  ;;  %p191_p8 = scmp.lt.s32.totalorder %s902_s24, 3 }
   0xe   : > { %p732_p9 = scmp.eq.s32.totalorder %s965_s25, 0  ;;  %s208_s11 = sshll.u32 %s1099_s3, 4  ;;  %s209_s11 = int_to_ptr.hbm [resolvable:$true] %s208_s11 }
   0xf   : > { %p192_p10 = pnand %p609_p7, %p191_p8  ;;  %s904_s12 = smov [#allocation2]  }
  0x10   : > { %s210_s13 = sshll.u32 %s904_s12, 4  ;;  %s905_s14 = smov 64   ;;  %s211_s13 = int_to_ptr.vmem [resolvable:$true] %s210_s13 }
  0x11   : > { %p721_p11 = pneg %p192_p10  ;;  %s906_s15 = smov 4  }
  0x12   : > { %238 = sbr.rel (%p192_p10) target bundleno = 337 (0x151), region = 40 }
  0x13   : > { %p722_p12 = pnand %p732_p9, %p721_p11 }
  0x15   : > { %724 = dma.hbm_to_vmem [thread:$0]  (!%p722_p12), %s209_s11, 1024, %s211_s13, [#allocation3], %s905_s14, %s905_s14, %s906_s15  }
  0x17   : > { %877 = dma.done.wait (%p732_p9), [#allocation3], 1024  }
  0x18   : > { %879 = vsyncadd (%p732_p9), [#allocation3], 4294966272  ;;  %v702_v0 = vld [vmem:[%s1097_s1 + $0x38] sm:$0xff]  ;;  %v701_v1 = vld [vmem:[%s1097_s1 + $0x30] sm:$0xff]  ;;  %s616_s9 = sshll.u32 %s965_s25, 1  ;;  %s1031_s28 = sand.u32 1, %s894_s22  }
  0x19   : > { %358 = vmatpush.bf16.msra.mxu0 %v702_v0  ;;  %v710_v2 = vld [vmem:[#allocation2 + $0x38] sm:$0xff]  ;;  %v709_v3 = vld [vmem:[#allocation2 + $0x30] sm:$0xff]  ;;  %v700_v4 = vld [vmem:[%s1097_s1 + $0x28] sm:$0xff]  ;;  %p275_p13 = scmp.lt.s32.totalorder %s616_s9, 3  ;;  %s614_s10 = sshll.u32 %s1031_s28, 4 }
  0x1a   : > { %445 = vmatpush.bf16.msra.mxu1 %v710_v2  ;;  %v708_v5 = vld [vmem:[#allocation2 + $0x28] sm:$0xff]  ;;  %v699_v6 = vld [vmem:[%s1097_s1 + $0x20] sm:$0xff]  ;;  %v698_v8 = vld [vmem:[%s1097_s1 + $0x18] sm:$0xff]  ;;  %s266_s11 = scalar_lea.vmem [#allocation5], %s614_s10  ;;  %s711_s13 = sshll.u32 %s965_s25, 4 }
  0x1b   : > { %v707_v7 = vld [vmem:[#allocation2 + $0x20] sm:$0xff]  ;;  %v697_v9 = vld [vmem:[%s1097_s1 + $0x10] sm:$0xff]  ;;  %s1110_s9 = smov (!%p275_p13, %s616_s9), 3  ;;  %v696_v10 = vld [vmem:[%s1097_s1 + $0x8] sm:$0xff]  ;;  %s481_s12 = sshll.u32 %s266_s11, 4  ;;  %s482_s12 = int_to_ptr.vmem [resolvable:$true] %s481_s12 }
  0x1c   : > { %s617_s16 = sshll.u32 %s1110_s9, 2  ;;  %v695_v11 = vld [vmem:[%s1097_s1] sm:$0xff]  ;;  %v706_v13 = vld [vmem:[#allocation2 + $0x18] sm:$0xff]  ;;  %v705_v14 = vld [vmem:[#allocation2 + $0x10] sm:$0xff]  ;;  %s464_s18 = scalar_lea.sflag [#allocation4], %s1031_s28 }
  0x1d   : > { %359 = vmatpush.bf16.msra.mxu0 %v701_v1  ;;  %s278_s26 = scalar_lea.vmem %s1096_s0, %s617_s16  ;;  %v704_v15 = vld [vmem:[#allocation2 + $0x8] sm:$0xff]  ;;  %v703_v16 = vld [vmem:[#allocation2] sm:$0xff]  ;;  %s480_s16 = scalar_lea.hbm %s1101_s5, %s711_s13 }
  0x1e   : > { %446 = vmatpush.bf16.msra.mxu1 %v709_v3  ;;  %v694_v12 = vld [vmem:[%s278_s26] sm:$0xff]  ;;  %s483_s17 = sshll.u32 %s480_s16, 4  ;;  %s824_s9 = scalar_lea.hbm %s1101_s5, 32  ;;  %s484_s17 = int_to_ptr.hbm [resolvable:$true] %s483_s17 }
  0x1f   : > { %v772_v17 = vld [vmem:[%s1098_s2] ss:$0 sm:$0xff]  ;;  %s818_s19 = sshra.s32 %s484_s17, 4  ;;  %s819_s19 = int_to_ptr.hbm [resolvable:$true] %s818_s19 }
  0x20   : > { %s820_s20 = scalar_lea.hbm %s819_s19, 16  ;;  %p825_p3 = scmp.lt.s32.totalorder %s819_s19, %s1101_s5 }
  0x21   : > { %360 = vmatpush.bf16.msra.mxu0 %v700_v4  ;;  %p821_p0 = scmp.ne.s32.totalorder %s819_s19, %s820_s20  ;;  %p826_p4 = scmp.lt.s32.totalorder %s824_s9, %s820_s20 }
  0x22   : > { %447 = vmatpush.bf16.msra.mxu1 %v708_v5 }
  0x23   : > { %p822_p1 = pnand %p821_p0, %p982_p5  ;;  %p827_p7 = por %p826_p4, %p825_p3 }
  0x25   : > { %361 = vmatpush.bf16.msra.mxu0 %v699_v6  ;;  %p823_p2 = pneg %p822_p1 }
  0x26   : > { %448 = vmatpush.bf16.msra.mxu1 %v707_v7 }
  0x27   : > { %p828_p8 = pnand %p827_p7, %p823_p2 }
  0x29   : > { %362 = vmatpush.bf16.msra.mxu0 %v698_v8 }
  0x2a   : > { %449 = vmatpush.bf16.msra.mxu1 %v706_v13 }
  0x2d   : > { %363 = vmatpush.bf16.msra.mxu0 %v697_v9 }
  0x2e   : > { %450 = vmatpush.bf16.msra.mxu1 %v705_v14 }
  0x31   : > { %364 = vmatpush.bf16.msra.mxu0 %v696_v10 }
  0x32   : > { %451 = vmatpush.bf16.msra.mxu1 %v704_v15 }
  0x35   : > { %365 = vmatpush.bf16.msra.mxu0 %v695_v11 }
  0x36   : > { %452 = vmatpush.bf16.msra.mxu1 %v703_v16 }
  0x38   : > { %366 = vmatmul.bf16.vlgmr.msra.gmra.mxu0 %v694_v12 }
  0xb5   : > { %v367_v18 = vpop.f32.mrf.mxu0 }
  0xb6   : > { %v368_v19 = vadd.f32 %v772_v17, %v367_v18 }
  0xb8   : > { %v372_v20 = vmax.f32 %v368_v19, 0.0 }
  0xba   : > { %374 = vst [vmem:[%s266_s11] sm:$0xff] %v372_v20 }
  0xbd   : > { %v369_v21 = vpop.f32.mrf.mxu0 }
  0xbe   : > { %v370_v22 = vadd.f32 %v772_v17, %v369_v21 }
  0xc0   : > { %v373_v23 = vmax.f32 %v370_v22, 0.0 }
  0xc2   : > { %375 = vst [vmem:[%s266_s11 + $0x8] sm:$0xff] %v373_v23  ;;  %v376_v24 = vpack.c.bf16 %v373_v23, %v372_v20 }
  0xc4   : > { %453 = vmatmul.bf16.vlgmr.msra.gmra.mxu1 %v376_v24 }
  0xc5   : > { %831 = shalt.err (!%p828_p8)
}
  0xc6   : > { %s907_s14 = smov 128   ;;  %s908_s15 = smov 8   ;;  %v773_v25 = vld [vmem:[%s1100_s4] ss:$0 sm:$0xff] }
  0xc7   : > { %717 = dma.vmem_to_hbm [thread:$0]  (%p982_p5), %s482_s12, 256, %s484_s17, %s464_s18, %s907_s14, %s907_s14, %s908_s15  }
  0xc8   : > { %s273_s19 = scalar_lea.vmem [#allocation6], %s614_s10  ;;  %s497_s9 = scalar_lea.hbm %s1102_s6, %s711_s13 }
  0xc9   : > { %s498_s25 = sshll.u32 %s273_s19, 4  ;;  %s500_s11 = sshll.u32 %s497_s9, 4  ;;  %s499_s25 = int_to_ptr.vmem [resolvable:$true] %s498_s25  ;;  %s501_s11 = int_to_ptr.hbm [resolvable:$true] %s500_s11 }
  0xca   : > { %s469_s12 = scalar_lea.sflag [#allocation7], %s1031_s28  ;;  %s846_s17 = sshra.s32 %s501_s11, 4  ;;  %s847_s17 = int_to_ptr.hbm [resolvable:$true] %s846_s17 }
  0xcb   : > { %s848_s18 = scalar_lea.hbm %s847_s17, 16  ;;  %s852_s13 = scalar_lea.hbm %s1102_s6, 32 }
  0xcc   : > { %p849_p9 = scmp.ne.s32.totalorder %s847_s17, %s848_s18  ;;  %p853_p12 = scmp.lt.s32.totalorder %s847_s17, %s1102_s6 }
  0xcd   : > { %p854_p13 = scmp.lt.s32.totalorder %s852_s13, %s848_s18 }
  0xce   : > { %p850_p10 = pnand %p849_p9, %p982_p5 }
  0xcf   : > { %p855_p0 = por %p854_p13, %p853_p12 }
  0xd0   : > { %p851_p11 = pneg %p850_p10 }
  0xd2   : > { %p856_p1 = pnand %p855_p0, %p851_p11 }
 0x141   : > { %v454_v26 = vpop.f32.mrf.mxu1 }
 0x142   : > { %v455_v27 = vadd.f32 %v773_v25, %v454_v26 }
 0x144   : > { %v459_v28 = vmax.f32 %v455_v27, 0.0 }
 0x146   : > { %461 = vst [vmem:[%s273_s19] sm:$0xff] %v459_v28 }
 0x149   : > { %v456_v29 = vpop.f32.mrf.mxu1 }
 0x14a   : > { %v457_v30 = vadd.f32 %v773_v25, %v456_v29 }
 0x14c   : > { %v460_v31 = vmax.f32 %v457_v30, 0.0 }
 0x14e   : > { %462 = vst [vmem:[%s273_s19 + $0x8] sm:$0xff] %v460_v31 }
 0x14f   : > { %859 = shalt.err (!%p856_p1)
}
 0x150   : > { %718 = dma.vmem_to_hbm [thread:$0]  (%p982_p5), %s499_s25, 256, %s501_s11, %s469_s12, %s907_s14, %s907_s14, %s908_s15  }
 0x151 PF: > { %p734_p2 = scmp.ge.s32.totalorder %s902_s24, 2  ;;  %s515_s28 = sand.u32 1, %s890_s21  }
 0x152   : > { %s516_s19 = scalar_lea.sflag [#allocation4], %s515_s28 }
 0x153   : > { %p726_p3 = pnand %p734_p2, %p986_p6 }
 0x155   : > { %p727_p4 = pneg %p726_p3 }
 0x157   : > { %881 = dma.done.wait (%p727_p4), %s516_s19, 256  }
 0x158   : > { %883 = vsyncadd (%p727_p4), %s516_s19, 4294967040  ;;  %s526_s29 = scalar_lea.sflag [#allocation7], %s515_s28 }
 0x159   : > { %885 = dma.done.wait (%p727_p4), %s526_s29, 256  }
 0x15a   : > { %887 = vsyncadd (%p727_p4), %s526_s29, 4294967040  ;;  %p21_p5 = scmp.ge.s32.totalorder %s969_s27, 4   ;;  %s1105_s21 = smov %s894_s22 }
 0x15b   : > { %s1106_s22 = smov %s898_s23  ;;  %s1107_s23 = smov %s980_s30 }
 0x15c   : > { %s1108_s24 = smov %s969_s27  ;;  %23 = sbr.rel (!%p21_p5) target bundleno = 6 (0x6), region = 97 }
 0x161   :  { %532 = vsyncpa [#allocation3], 1 }
 0x162   :  { %534 = vsyncpa [#allocation3 + $0x1], 1 }
 0x163   :  { %535 = vsyncpa [#allocation4], 1 }
 0x164   :  { %537 = vsyncpa [#allocation4 + $0x1], 1 }
 0x165   :  { %538 = vsyncpa [#allocation7], 1 }
 0x166   :  { %540 = vsyncpa [#allocation7 + $0x1], 1 }

</bundles_post_ra>
